<compile_context>
chip_gen: v5e
topology: v5e:2x2
jax: 0.10.0
libtpu: 0.0.40
codegen_flags: <defaults>
</compile_context>

<pallas_src>
import functools
import numpy as np

import jax
import jax.numpy as jnp
from jax import lax
from jax.experimental import pallas as pl
from jax.experimental.pallas import tpu as pltpu

# ----------------------------- problem sizes --------------------------------
V = 2          # number of views (len(inputs)/3)
N = 2          # batch
C_IN = 4       # input_nc (= outer_nc by default)
INNER = 8      # inner_nc
OUTER = 4      # outer_nc
H = 2          # spatial height (must be 2 for the innermost cat to be well-formed)
W = 16         # spatial width
USE_AVERAGE = False      # module's global flag; False => max over dim 2
BN_EPS = 1e-5


# --------------------------- parameter preprocessing -------------------------
def bilinear_matrix(w_in, w_out):
    """PyTorch nn.Upsample(mode='bilinear', align_corners=False) along width as a
    (w_in, w_out) interpolation matrix (numpy)."""
    U = np.zeros((w_in, w_out), np.float32)
    scale = w_in / w_out
    for x in range(w_out):
        src = (x + 0.5) * scale - 0.5
        src = max(src, 0.0)
        x0 = min(int(np.floor(src)), w_in - 1)
        x1 = min(x0 + 1, w_in - 1)
        lam = src - x0
        U[x0, x] += 1.0 - lam
        U[x1, x] += lam
    return U


def prepare_params(w_down, w_up, gamma, beta, n_batch, height, width):
    """Lower both convolutions (with the bilinear upsample folded in) to dense
    matrices, plus factored BatchNorm pooling matrices.

    Weight-side preprocessing only (no activation data touched); in a real model it
    runs once per weight update, not per forward call."""
    inner, cin = int(w_down.shape[0]), int(w_down.shape[1])
    outer = int(w_up.shape[0])
    assert height == 2, "innermost block requires H == 2 (2x2 bottleneck)"
    assert width % 2 == 0
    wo = width // 2                    # down-conv output width (Ho == 1)
    hw_up = height * width             # up-conv output spatial size (2 * W)

    # ---- down conv (k=4, s=2, p=1, no bias) as a (Cin*H*W, inner*Wo) matrix ----
    # Output row ho=0 samples padded rows kh in {1,2} <-> input rows h in {0,1}.
    kh_sel = np.zeros((height, 4), np.float32)
    for h in range(height):
        kh_sel[h, h + 1] = 1.0
    # Input column w contributes to (wo, kw) iff w == 2*wo + kw - 1 (zero padding).
    kw_sel = np.zeros((width, wo, 4), np.float32)
    for o_w in range(wo):
        for kw in range(4):
            w_col = 2 * o_w + kw - 1
            if 0 <= w_col < width:
                kw_sel[w_col, o_w, kw] = 1.0
    wd = jnp.einsum('ocKk,hK,wWk->chwoW', w_down,
                    jnp.asarray(kh_sel), jnp.asarray(kw_sel))
    wd = wd.reshape(cin * height * width, inner * wo)

    # ---- bilinear 2x width upsample: block-diagonal interpolation matrix ----
    u = bilinear_matrix(wo, width)                                   # (Wo, W)
    ubig = jnp.asarray(np.kron(np.eye(inner, dtype=np.float32), u))  # (inner*Wo, inner*W)

    # ---- up conv (3x3, p=1, no bias) on the row-duplicated upsample ----
    # The height-1 bilinear upsample duplicates its single row, so output row 0 sees
    # effective kh weights (1+2) and output row 1 sees (0+1).
    hk_sel = np.array([[0., 1., 1.], [1., 1., 0.]], np.float32)      # (h_out, kh)
    xw_sel = np.zeros((width, width, 3), np.float32)                 # x == w + kw - 1
    for w_col in range(width):
        for kw in range(3):
            x_col = w_col + kw - 1
            if 0 <= x_col < width:
                xw_sel[x_col, w_col, kw] = 1.0
    wu = jnp.einsum('ocKk,hK,xwk->cxohw', w_up,
                    jnp.asarray(hk_sel), jnp.asarray(xw_sel))
    wu = wu.reshape(inner * width, outer * height * width)

    # Fold upsample into the up conv: ReLU(central) @ wu_comb == up path output.
    wu_comb = jnp.dot(ubig, wu)                                       # (inner*Wo, outer*H*W)

    # ---- BatchNorm helpers: factored per-channel pool + broadcast, tiled affine ----
    pool_dn = jnp.asarray(
        np.kron(np.eye(outer, dtype=np.float32), np.ones((hw_up, 1), np.float32)))
    pool_up = jnp.asarray(
        np.kron(np.eye(outer, dtype=np.float32), np.ones((1, hw_up), np.float32))
        / float(n_batch * hw_up))
    gb = jnp.stack([jnp.repeat(gamma, hw_up), jnp.repeat(beta, hw_up)], axis=0)

    return wd, wu_comb, pool_dn, pool_up, gb


# ------------------------------ fused Pallas kernel ---------------------------
def fused_unet_inner_kernel(x_ref, wd_ref, wu_ref, pd_ref, pu_ref, gb_ref,
                            res_ref, central_ref, *, n_views, n_batch, use_average):
    # x_ref: (V*N, Cin*H*W) original inputs, (c, h, w)-flattened per (view, batch) row.
    cin_hw = x_ref.shape[1]
    x = x_ref[...]

    # Skip pass-through stored immediately (lane-dense first 128-lane tile); this vst
    # issues early and overlaps the serial MXU chain instead of sitting in the epilogue.
    res_ref[:, 0:cin_hw] = x

    a = jnp.where(x >= 0, x, 0.2 * x)                                 # LeakyReLU(0.2)

    # down conv for all views at once: (V*N, Cin*H*W) @ (Cin*H*W, inner*Wo)
    d = jnp.dot(a, wd_ref[...], preferred_element_type=jnp.float32)

    # concat over views along H (each view's Ho == 1) + max / mean over that axis,
    # done as an elementwise reduction over the (v-major) row blocks.
    central = d[0:n_batch, :]
    for v in range(1, n_views):
        blk = d[v * n_batch:(v + 1) * n_batch, :]
        if use_average:
            central = central + blk
        else:
            central = jnp.maximum(central, blk)
    if use_average:
        central = central * (1.0 / n_views)

    # central_fv (pre-ReLU), lane-padded so the store is a full unmasked 128-lane vst.
    pad_lanes = central_ref.shape[1] - central.shape[1]
    if pad_lanes:
        central_out = jnp.concatenate(
            [central, jnp.zeros((central.shape[0], pad_lanes), central.dtype)], axis=1)
    else:
        central_out = central
    central_ref[...] = central_out

    # up path: ReLU -> (bilinear upsample + 3x3 conv folded into one matrix)
    r = jnp.maximum(central, 0.0)                                     # uprelu
    y = jnp.dot(r, wu_ref[...], preferred_element_type=jnp.float32)   # (N, outer*H*W)

    # BatchNorm (training-mode batch statistics, biased variance).  Per-channel stats
    # via ONE stacked pooling matmul chain: rows of `stats` are [sum(y), sum(y*y)],
    # pooled down to per-channel then broadcast back across the 32-lane channel blocks.
    s1 = jnp.sum(y, axis=0, keepdims=True)
    s2 = jnp.sum(y * y, axis=0, keepdims=True)
    stats = jnp.concatenate([s1, s2], axis=0)                          # (2, outer*H*W)
    pooled = jnp.dot(
        jnp.dot(stats, pd_ref[...], preferred_element_type=jnp.float32),
        pu_ref[...], preferred_element_type=jnp.float32)               # (2, outer*H*W)
    mean = pooled[0:1, :]
    var = pooled[1:2, :] - mean * mean                                 # E[y^2] - mean^2
    ybn = (y - mean) * lax.rsqrt(var + BN_EPS) * gb_ref[0:1, :] + gb_ref[1:2, :]

    # final skip-concat: the shared up-path channels are stored directly per view into
    # the upper lane-tile of the result slab (no concatenated temporaries).
    outer_hw = ybn.shape[1]
    for v in range(n_views):
        res_ref[v * n_batch:(v + 1) * n_batch, cin_hw:cin_hw + outer_hw] = ybn


# ------------------------------ forward wrapper ------------------------------
def forward_pallas(xs, angles, extras, params):
    # `angles` / `extras` mirror the module's 3-per-view input signature; they are
    # passed through unused in the innermost (has_angle=False) branch.
    del angles, extras
    wd, wu_comb, pool_dn, pool_up, gb = params
    n_views, n_batch, cin, height, width = xs.shape
    wo = width // 2
    inner_wo = int(wd.shape[1])
    inner = inner_wo // wo
    outer_hw = int(wu_comb.shape[1])
    outer = outer_hw // (height * width)
    cin_hw = cin * height * width
    vn = n_views * n_batch
    central_lanes = -(-inner_wo // 128) * 128         # lane-dense padded output width

    x_flat = xs.reshape(vn, cin_hw)                   # free reshape

    kernel = functools.partial(fused_unet_inner_kernel, n_views=n_views,
                               n_batch=n_batch, use_average=USE_AVERAGE)

    # Advisory cost hint so XLA does not assume the custom call is expensive.
    flops = 2 * (vn * cin_hw * inner_wo                     # down-conv matmul
                 + n_batch * inner_wo * outer_hw            # fused upsample+up-conv
                 + 2 * outer_hw * outer + 2 * outer * outer_hw)  # BN pooling matmuls
    flops += 8 * vn * cin_hw + 12 * n_batch * outer_hw      # elementwise
    bytes_accessed = 4 * (x_flat.size + wd.size + wu_comb.size + pool_dn.size
                          + pool_up.size + gb.size
                          + vn * (cin + outer) * height * width
                          + n_batch * central_lanes)
    cost = pl.CostEstimate(flops=int(flops), transcendentals=int(n_batch * outer_hw),
                           bytes_accessed=int(bytes_accessed))

    result_flat, central_flat = pl.pallas_call(
        kernel,
        out_shape=(
            jax.ShapeDtypeStruct((vn, (cin + outer) * height * width), jnp.float32),
            jax.ShapeDtypeStruct((n_batch, central_lanes), jnp.float32),
        ),
        in_specs=[pl.BlockSpec(memory_space=pltpu.MemorySpace.VMEM)] * 6,
        out_specs=(pl.BlockSpec(memory_space=pltpu.MemorySpace.VMEM),
                   pl.BlockSpec(memory_space=pltpu.MemorySpace.VMEM)),
        cost_estimate=cost,
    )(x_flat, wd, wu_comb, pool_dn, pool_up, gb)

    # wrapper-side layout plumbing only: free reshapes + pad-lane slice + axis split.
    res = result_flat.reshape(n_views, n_batch, cin + outer, height, width)
    central_fv = central_flat[:, :inner_wo].reshape(n_batch, inner, 1, wo)
    results = tuple(res[v] for v in range(n_views))
    return results + (central_fv,)


# ------------------------------ pure-JAX reference ---------------------------
def forward_ref(xs, w_down, w_up, gamma, beta, U):
    dn = lambda x, w, s: lax.conv_general_dilated(
        x, w, (s, s), [(1, 1), (1, 1)], dimension_numbers=('NCHW', 'OIHW', 'NCHW'))
    downs = []
    for v in range(xs.shape[0]):
        a = jnp.where(xs[v] >= 0, xs[v], 0.2 * xs[v])
        downs.append(dn(a, w_down, 2))
    model3d = jnp.concatenate(downs, axis=2)
    if USE_AVERAGE:
        central = jnp.mean(model3d, axis=2, keepdims=True)
    else:
        central = jnp.max(model3d, axis=2, keepdims=True)
    r = jnp.maximum(central, 0.0)
    upw = jnp.einsum('nchw,wx->nchx', r, U)
    up2 = jnp.concatenate([upw, upw], axis=2)
    yy = dn(up2, w_up, 1)
    mean = yy.mean(axis=(0, 2, 3), keepdims=True)
    var = ((yy - mean) ** 2).mean(axis=(0, 2, 3), keepdims=True)
    cfu = (yy - mean) / jnp.sqrt(var + BN_EPS)
    cfu = cfu * gamma.reshape(1, -1, 1, 1) + beta.reshape(1, -1, 1, 1)
    res = tuple(jnp.concatenate([xs[v], cfu], axis=1) for v in range(xs.shape[0]))
    return res + (central,)


# ------------------------------------ main ------------------------------------
if __name__ == "__main__":
    key = jax.random.PRNGKey(0)
    kx, ka, ke, k1, k2 = jax.random.split(key, 5)

    # inputs: per view (feature map, angle, aux) — angle/aux unused in this branch
    xs = jax.random.normal(kx, (V, N, C_IN, H, W), jnp.float32)
    angles = jax.random.normal(ka, (V, N, 2, 1, 1), jnp.float32)
    extras = jax.random.normal(ke, (V, N, 1, 1, 1), jnp.float32)

    # deterministic parameter init (use_bias=False because norm_layer is BatchNorm2d)
    w_down = jax.random.normal(k1, (INNER, C_IN, 4, 4), jnp.float32) * 0.1
    w_up = jax.random.normal(k2, (OUTER, INNER, 3, 3), jnp.float32) * 0.1
    gamma = jnp.ones((OUTER,), jnp.float32)   # BatchNorm2d default affine init
    beta = jnp.zeros((OUTER,), jnp.float32)

    # one-time, data-independent weight lowering (conv+upsample -> dense matrices etc.)
    params = prepare_params(w_down, w_up, gamma, beta, N, H, W)

    fwd = jax.jit(forward_pallas)
    outs = fwd(xs, angles, extras, params)
    outs = jax.block_until_ready(outs)

    U = jnp.asarray(bilinear_matrix(W // 2, W))
    refs = forward_ref(xs, w_down, w_up, gamma, beta, U)
    for o, r in zip(outs, refs):
        assert o.shape == r.shape, (o.shape, r.shape)
        np.testing.assert_allclose(np.asarray(o), np.asarray(r), rtol=1e-4, atol=1e-4)

    # TODO(synk): outermost / middle branches recurse through `submodule`; only the
    # self-contained innermost configuration is implemented here.
    print("KERNEL_OK")
</pallas_src>

<mosaic_0001>
module attributes {stable_mosaic.version = 11 : i64} {
  func.func @fused_unet_inner_kernel(%arg0: memref<4x128xf32, #tpu.memory_space<vmem>>, %arg1: memref<128x64xf32, #tpu.memory_space<vmem>>, %arg2: memref<64x128xf32, #tpu.memory_space<vmem>>, %arg3: memref<128x4xf32, #tpu.memory_space<vmem>>, %arg4: memref<4x128xf32, #tpu.memory_space<vmem>>, %arg5: memref<2x128xf32, #tpu.memory_space<vmem>>, %arg6: memref<4x256xf32, #tpu.memory_space<vmem>>, %arg7: memref<2x128xf32, #tpu.memory_space<vmem>>) attributes {dimension_semantics = [], scalar_prefetch = 0 : i64, scratch_operands = 0 : i64, tpu.core_type = #tpu.core_type<tc>} {
    %c0 = arith.constant 0 : index
    %c0_0 = arith.constant 0 : index
    %0 = vector.load %arg0[%c0, %c0_0] : memref<4x128xf32, #tpu.memory_space<vmem>>, vector<4x128xf32>
    %c0_1 = arith.constant 0 : index
    %c0_2 = arith.constant 0 : index
    %1 = vector.load %arg6[%c0_1, %c0_2] : memref<4x256xf32, #tpu.memory_space<vmem>>, vector<4x128xf32>
    tpu.vector_store %arg6[%c0_1, %c0_2], %0 {strides = array<i32>} : memref<4x256xf32, #tpu.memory_space<vmem>>, vector<4x128xf32>,
    %cst = arith.constant 0.000000e+00 : f32
    %2 = vector.broadcast %cst : f32 to vector<4x128xf32>
    %3 = arith.cmpf oge, %0, %2 : vector<4x128xf32>
    %cst_3 = arith.constant 2.000000e-01 : f32
    %4 = vector.broadcast %cst_3 : f32 to vector<4x128xf32>
    %5 = arith.mulf %4, %0 : vector<4x128xf32>
    %6 = arith.select %3, %0, %5 : vector<4x128xi1>, vector<4x128xf32>
    %c0_4 = arith.constant 0 : index
    %c0_5 = arith.constant 0 : index
    %7 = vector.load %arg1[%c0_4, %c0_5] : memref<128x64xf32, #tpu.memory_space<vmem>>, vector<128x64xf32>
    %cst_6 = arith.constant dense<0.000000e+00> : vector<4x64xf32>
    %8 = tpu.matmul %6, %7, %cst_6 {dimension_numbers = #tpu.dot_dimension_numbers<[1], [0], [0], [1], [0, 0, 1, 1], [], []>} : vector<4x128xf32>, vector<128x64xf32>, vector<4x64xf32> -> vector<4x64xf32>
    %9 = vector.extract_strided_slice %8 {offsets = [0, 0], sizes = [2, 64], strides = [1, 1]} : vector<4x64xf32> to vector<2x64xf32>
    %10 = vector.extract_strided_slice %8 {offsets = [2, 0], sizes = [2, 64], strides = [1, 1]} : vector<4x64xf32> to vector<2x64xf32>
    %11 = arith.maximumf %9, %10 : vector<2x64xf32>
    %cst_7 = arith.constant 0.000000e+00 : f32
    %12 = vector.broadcast %cst_7 : f32 to vector<2x64xf32>
    %13 = tpu.concatenate %11, %12 in 1 : vector<2x64xf32>, vector<2x64xf32> -> vector<2x128xf32>
    %c0_8 = arith.constant 0 : index
    %c0_9 = arith.constant 0 : index
    %14 = vector.load %arg7[%c0_8, %c0_9] : memref<2x128xf32, #tpu.memory_space<vmem>>, vector<2x128xf32>
    tpu.vector_store %arg7[%c0_8, %c0_9], %13 {strides = array<i32>} : memref<2x128xf32, #tpu.memory_space<vmem>>, vector<2x128xf32>,
    %cst_10 = arith.constant 0.000000e+00 : f32
    %15 = vector.broadcast %cst_10 : f32 to vector<2x64xf32>
    %16 = arith.maximumf %11, %15 : vector<2x64xf32>
    %c0_11 = arith.constant 0 : index
    %c0_12 = arith.constant 0 : index
    %17 = vector.load %arg2[%c0_11, %c0_12] : memref<64x128xf32, #tpu.memory_space<vmem>>, vector<64x128xf32>
    %cst_13 = arith.constant dense<0.000000e+00> : vector<2x128xf32>
    %18 = tpu.matmul %16, %17, %cst_13 {dimension_numbers = #tpu.dot_dimension_numbers<[1], [0], [0], [1], [0, 0, 1, 1], [], []>} : vector<2x64xf32>, vector<64x128xf32>, vector<2x128xf32> -> vector<2x128xf32>
    %cst_14 = arith.constant dense<0.000000e+00> : vector<128xf32>
    %19 = vector.multi_reduction <add>, %18, %cst_14 [0] : vector<2x128xf32> to vector<128xf32>
    %20 = vector.shape_cast %19 : vector<128xf32> to vector<1x128xf32>
    %21 = arith.mulf %18, %18 : vector<2x128xf32>
    %cst_15 = arith.constant dense<0.000000e+00> : vector<128xf32>
    %22 = vector.multi_reduction <add>, %21, %cst_15 [0] : vector<2x128xf32> to vector<128xf32>
    %23 = vector.shape_cast %22 : vector<128xf32> to vector<1x128xf32>
    %24 = tpu.concatenate %20, %23 in 0 : vector<1x128xf32>, vector<1x128xf32> -> vector<2x128xf32>
    %c0_16 = arith.constant 0 : index
    %c0_17 = arith.constant 0 : index
    %25 = vector.load %arg3[%c0_16, %c0_17] : memref<128x4xf32, #tpu.memory_space<vmem>>, vector<128x4xf32>
    %cst_18 = arith.constant dense<0.000000e+00> : vector<2x4xf32>
    %26 = tpu.matmul %24, %25, %cst_18 {dimension_numbers = #tpu.dot_dimension_numbers<[1], [0], [0], [1], [0, 0, 1, 1], [], []>} : vector<2x128xf32>, vector<128x4xf32>, vector<2x4xf32> -> vector<2x4xf32>
    %c0_19 = arith.constant 0 : index
    %c0_20 = arith.constant 0 : index
    %27 = vector.load %arg4[%c0_19, %c0_20] : memref<4x128xf32, #tpu.memory_space<vmem>>, vector<4x128xf32>
    %cst_21 = arith.constant dense<0.000000e+00> : vector<2x128xf32>
    %28 = tpu.matmul %26, %27, %cst_21 {dimension_numbers = #tpu.dot_dimension_numbers<[1], [0], [0], [1], [0, 0, 1, 1], [], []>} : vector<2x4xf32>, vector<4x128xf32>, vector<2x128xf32> -> vector<2x128xf32>
    %29 = vector.extract_strided_slice %28 {offsets = [0, 0], sizes = [1, 128], strides = [1, 1]} : vector<2x128xf32> to vector<1x128xf32>
    %30 = vector.extract_strided_slice %28 {offsets = [1, 0], sizes = [1, 128], strides = [1, 1]} : vector<2x128xf32> to vector<1x128xf32>
    %31 = arith.mulf %29, %29 : vector<1x128xf32>
    %32 = arith.subf %30, %31 : vector<1x128xf32>
    %33 = vector.broadcast %29 : vector<1x128xf32> to vector<2x128xf32>
    %34 = arith.subf %18, %33 : vector<2x128xf32>
    %cst_22 = arith.constant 9.99999974E-6 : f32
    %35 = vector.broadcast %cst_22 : f32 to vector<1x128xf32>
    %36 = arith.addf %32, %35 : vector<1x128xf32>
    %37 = math.rsqrt %36 : vector<1x128xf32>
    %38 = vector.broadcast %37 : vector<1x128xf32> to vector<2x128xf32>
    %39 = arith.mulf %34, %38 : vector<2x128xf32>
    %c0_23 = arith.constant 0 : index
    %c0_24 = arith.constant 0 : index
    %40 = vector.load %arg5[%c0_23, %c0_24] : memref<2x128xf32, #tpu.memory_space<vmem>>, vector<1x128xf32>
    %41 = vector.broadcast %40 : vector<1x128xf32> to vector<2x128xf32>
    %42 = arith.mulf %39, %41 : vector<2x128xf32>
    %c1 = arith.constant 1 : index
    %c0_25 = arith.constant 0 : index
    %43 = vector.load %arg5[%c1, %c0_25] : memref<2x128xf32, #tpu.memory_space<vmem>>, vector<1x128xf32>
    %44 = vector.broadcast %43 : vector<1x128xf32> to vector<2x128xf32>
    %45 = arith.addf %42, %44 : vector<2x128xf32>
    %c0_26 = arith.constant 0 : index
    %c128 = arith.constant 128 : index
    %46 = vector.load %arg6[%c0_26, %c128] : memref<4x256xf32, #tpu.memory_space<vmem>>, vector<2x128xf32>
    tpu.vector_store %arg6[%c0_26, %c128], %45 {strides = array<i32>} : memref<4x256xf32, #tpu.memory_space<vmem>>, vector<2x128xf32>,
    %c2 = arith.constant 2 : index
    %c128_27 = arith.constant 128 : index
    %47 = vector.load %arg6[%c2, %c128_27] : memref<4x256xf32, #tpu.memory_space<vmem>>, vector<2x128xf32>
    tpu.vector_store %arg6[%c2, %c128_27], %45 {strides = array<i32>} : memref<4x256xf32, #tpu.memory_space<vmem>>, vector<2x128xf32>,
    return
  }
}

</mosaic_0001>

<bundles_post_ra>
// kernel: squeeze.2
= control target key start
LH: loop header
LB: loop body
LE: loop exit
PB: predicated region body
PF: predicated region fallthrough
CT: control target
= control target key end

     0   :  { %s309_s0 = inlined_call_operand.vmem [shape: f32[2,256], index: 0, kind: input, shape index: {}]   ;;  %s310_s1 = inlined_call_operand.hbm [shape: f32[2,8,2,16], index: 1, kind: output, shape index: {}]  }
   0x1   :  { %v215_v0 = vld [vmem:[%s309_s0 + $0x2] sm:$0x3]  ;;  %v9_v1 = vld [vmem:[%s309_s0] sm:$0x3] }
   0x2   :  { %8 = vst [vmem:[#allocation3 + $0x8] sm:$0x3] %v215_v0 }
   0x3   :  { %10 = vst [vmem:[#allocation3] sm:$0x3] %v9_v1 }
   0x4   :  { %2 = vsyncpa [#allocation1], 0  ;;  %s250_s0 = smov 80   ;;  %s251_s10 = smov 112   ;;  %vm12_vm0 = vcmask 130048  }
   0x5   :  { %s252_s11 = smov 48   ;;  %s253_s12 = smov 64  }
   0x6   :  { %s254_s13 = smov 96   ;;  %s255_s14 = smov 32  }
   0x7   :  { %s256_s15 = smov 16   ;;  %s257_s16 = smov [#allocation0]  }
   0x8   :  { %s206_s17 = sshll.u32 %s257_s16, 4  ;;  %s208_s1 = sshll.u32 %s310_s1, 4  ;;  %s207_s17 = int_to_ptr.vmem [resolvable:$true] %s206_s17  ;;  %s209_s1 = int_to_ptr.hbm [resolvable:$true] %s208_s1 }
   0x9   :  { %v17_v4 = vld [vmem:[#allocation3 + $0x8] sm:$0x3]  }
   0xa   :  { %v47_v2 = vld.sshfl [vmem:[#allocation3] sm:$0xff pattern:$0x99999810]   ;;  %20 = vst.msk [vmem:[#allocation2 + $0x20] sm:$0x1] %vm12_vm0, %v17_v4  }
   0xb   :  { %48 = vrot.lane.b32.xlu1 %v47_v2, %s250_s0  ;;  %24 = vrot.lane.b32.xlu0 %v47_v2, %s251_s10  ;;  %v11_v3 = vld [vmem:[#allocation3] sm:$0x3]   ;;  %22 = vst.msk [vmem:[#allocation2 + $0x5f] sm:$0x2] %vm12_vm0, %v17_v4  }
   0xc   :  { %72 = vrot.lane.b32.xlu2 %v47_v2, %s252_s11  ;;  %13 = vst.msk [vmem:[#allocation2] sm:$0x1] %vm12_vm0, %v11_v3  }
   0xd   :  { %15 = vst.msk [vmem:[#allocation2 + $0x3f] sm:$0x2] %vm12_vm0, %v11_v3  }
  0x13   :  { %60 = vrot.lane.b32.xlu1 %v47_v2, %s253_s12  ;;  %36 = vrot.lane.b32.xlu0 %v47_v2, %s254_s13 }
  0x14   :  { %84 = vrot.lane.b32.xlu2 %v47_v2, %s255_s14 }
  0x1b   :  { %96 = vrot.lane.b32.xlu0 %v47_v2, %s256_s15 }
  0x66   :  { %v73_v5 = vpop.permute.xlu2 %72  }
  0x67   :  { %76 = vst.msk [vmem:[#allocation2 + $0x11] sm:$0x1] %vm12_vm0, %v73_v5  }
  0x68   :  { %78 = vst.msk [vmem:[#allocation2 + $0x50] sm:$0x2] %vm12_vm0, %v73_v5  }
  0x69   :  { %80 = vst.msk [vmem:[#allocation2 + $0x2f] sm:$0x4] %vm12_vm0, %v73_v5  }
  0x6a   :  { %82 = vst.msk [vmem:[#allocation2 + $0x6e] sm:$0x8] %vm12_vm0, %v73_v5  }
  0x6e   :  { %v85_v6 = vpop.permute.xlu2 %84  }
  0x6f   :  { %88 = vst.msk [vmem:[#allocation2 + $0x18] sm:$0x1] %vm12_vm0, %v85_v6  }
  0x70   :  { %90 = vst.msk [vmem:[#allocation2 + $0x57] sm:$0x2] %vm12_vm0, %v85_v6  }
  0x71   :  { %92 = vst.msk [vmem:[#allocation2 + $0x36] sm:$0x4] %vm12_vm0, %v85_v6  }
  0x72   :  { %94 = vst.msk [vmem:[#allocation2 + $0x75] sm:$0x8] %vm12_vm0, %v85_v6  }
  0x7d   :  { %v49_v7 = vpop.permute.xlu1 %48   ;;  %v25_v8 = vpop.permute.xlu0 %24  }
  0x7e   :  { %52 = vst.msk [vmem:[#allocation2 + $0x9] sm:$0x1] %vm12_vm0, %v49_v7  }
  0x7f   :  { %54 = vst.msk [vmem:[#allocation2 + $0x48] sm:$0x2] %vm12_vm0, %v49_v7  }
  0x80   :  { %56 = vst.msk [vmem:[#allocation2 + $0x27] sm:$0x4] %vm12_vm0, %v49_v7  }
  0x81   :  { %58 = vst.msk [vmem:[#allocation2 + $0x66] sm:$0x8] %vm12_vm0, %v49_v7  }
  0x82   :  { %28 = vst.msk [vmem:[#allocation2 + $0x1] sm:$0x1] %vm12_vm0, %v25_v8  }
  0x83   :  { %30 = vst.msk [vmem:[#allocation2 + $0x40] sm:$0x2] %vm12_vm0, %v25_v8  }
  0x84   :  { %32 = vst.msk [vmem:[#allocation2 + $0x1f] sm:$0x4] %vm12_vm0, %v25_v8  }
  0x85   :  { %34 = vst.msk [vmem:[#allocation2 + $0x5e] sm:$0x8] %vm12_vm0, %v25_v8   ;;  %v61_v9 = vpop.permute.xlu1 %60   ;;  %v37_v10 = vpop.permute.xlu0 %36  }
  0x86   :  { %64 = vst.msk [vmem:[#allocation2 + $0x10] sm:$0x1] %vm12_vm0, %v61_v9  }
  0x87   :  { %66 = vst.msk [vmem:[#allocation2 + $0x4f] sm:$0x2] %vm12_vm0, %v61_v9  }
  0x88   :  { %68 = vst.msk [vmem:[#allocation2 + $0x2e] sm:$0x4] %vm12_vm0, %v61_v9  }
  0x89   :  { %v109_v11 = vld [vmem:[#allocation2] sm:$0x3]  ;;  %70 = vst.msk [vmem:[#allocation2 + $0x6d] sm:$0x8] %vm12_vm0, %v61_v9  }
  0x8a   :  { %112 = vst [vmem:[#allocation0] sm:$0x3] %v109_v11  ;;  %v156_v12 = vld [vmem:[#allocation2 + $0x40] sm:$0x3] }
  0x8b   :  { %v132_v13 = vld [vmem:[#allocation2 + $0x20] sm:$0x3]  ;;  %160 = vst [vmem:[#allocation0 + $0x10] sm:$0x3] %v156_v12 }
  0x8c   :  { %136 = vst [vmem:[#allocation0 + $0x8] sm:$0x3] %v132_v13  ;;  %v180_v14 = vld [vmem:[#allocation2 + $0x60] sm:$0x3] }
  0x8d   :  { %184 = vst [vmem:[#allocation0 + $0x18] sm:$0x3] %v180_v14  ;;  %v120_v15 = vld [vmem:[#allocation2 + $0x10] sm:$0x3]  ;;  %v97_v16 = vpop.permute.xlu0 %96  }
  0x8e   :  { %124 = vst [vmem:[#allocation0 + $0x4] sm:$0x3] %v120_v15  ;;  %v168_v17 = vld [vmem:[#allocation2 + $0x50] sm:$0x3] }
  0x8f   :  { %v144_v18 = vld [vmem:[#allocation2 + $0x30] sm:$0x3]  ;;  %172 = vst [vmem:[#allocation0 + $0x14] sm:$0x3] %v168_v17 }
  0x90   :  { %148 = vst [vmem:[#allocation0 + $0xc] sm:$0x3] %v144_v18  ;;  %v192_v19 = vld [vmem:[#allocation2 + $0x70] sm:$0x3] }
  0x91   :  { %196 = vst [vmem:[#allocation0 + $0x1c] sm:$0x3] %v192_v19 }
  0x92   :  { %40 = vst.msk [vmem:[#allocation2 + $0x8] sm:$0x1] %vm12_vm0, %v37_v10  }
  0x93   :  { %42 = vst.msk [vmem:[#allocation2 + $0x47] sm:$0x2] %vm12_vm0, %v37_v10  }
  0x94   :  { %44 = vst.msk [vmem:[#allocation2 + $0x26] sm:$0x4] %vm12_vm0, %v37_v10  }
  0x95   :  { %46 = vst.msk [vmem:[#allocation2 + $0x65] sm:$0x8] %vm12_vm0, %v37_v10  }
  0x96   :  { %100 = vst.msk [vmem:[#allocation2 + $0x19] sm:$0x1] %vm12_vm0, %v97_v16  }
  0x97   :  { %102 = vst.msk [vmem:[#allocation2 + $0x58] sm:$0x2] %vm12_vm0, %v97_v16  }
  0x98   :  { %104 = vst.msk [vmem:[#allocation2 + $0x37] sm:$0x4] %vm12_vm0, %v97_v16  }
  0x99   :  { %v114_v20 = vld [vmem:[#allocation2 + $0x8] sm:$0x3]  ;;  %106 = vst.msk [vmem:[#allocation2 + $0x76] sm:$0x8] %vm12_vm0, %v97_v16  }
  0x9a   :  { %118 = vst [vmem:[#allocation0 + $0x2] sm:$0x3] %v114_v20  ;;  %v162_v21 = vld [vmem:[#allocation2 + $0x48] sm:$0x3] }
  0x9b   :  { %v138_v22 = vld [vmem:[#allocation2 + $0x28] sm:$0x3]  ;;  %166 = vst [vmem:[#allocation0 + $0x12] sm:$0x3] %v162_v21 }
  0x9c   :  { %v186_v23 = vld [vmem:[#allocation2 + $0x68] sm:$0x3]  ;;  %142 = vst [vmem:[#allocation0 + $0xa] sm:$0x3] %v138_v22 }
  0x9d   :  { %190 = vst [vmem:[#allocation0 + $0x1a] sm:$0x3] %v186_v23  ;;  %v126_v24 = vld [vmem:[#allocation2 + $0x18] sm:$0x3] }
  0x9e   :  { %130 = vst [vmem:[#allocation0 + $0x6] sm:$0x3] %v126_v24  ;;  %v174_v25 = vld [vmem:[#allocation2 + $0x58] sm:$0x3] }
  0x9f   :  { %v150_v26 = vld [vmem:[#allocation2 + $0x38] sm:$0x3]  ;;  %178 = vst [vmem:[#allocation0 + $0x16] sm:$0x3] %v174_v25 }
  0xa0   :  { %v198_v27 = vld [vmem:[#allocation2 + $0x78] sm:$0x3]  ;;  %154 = vst [vmem:[#allocation0 + $0xe] sm:$0x3] %v150_v26 }
  0xa1   :  { %202 = vst [vmem:[#allocation0 + $0x1e] sm:$0x3] %v198_v27 }
  0xa2   :  { %211 = dma.vmem_to_hbm [thread:$0]  %s207_s17, 512, %s209_s1, [#allocation1]  }
  0xa3   :  { %248 = dma.done.wait [#allocation1], 512  }
  0xa4   :  { %249 = vsyncadd [#allocation1], 4294966784 }
  0xa5   :  { %214 = vsyncpa [#allocation1], 1 }

// kernel: forward_pallas.1
= control target key start
LH: loop header
LB: loop body
LE: loop exit
PB: predicated region body
PF: predicated region fallthrough
CT: control target
= control target key end

     0   :  { %vm70_vm1 = vcmask 523264   ;;  %vm105_vm2 = vcmask 1041408   ;;  %vm121_vm3 = vcmask 1040384   ;;  %vm164_vm4 = vcmask 1043456   ;;  %s418_s1 = inlined_call_operand.vmem [shape: f32[128,64], index: 1, kind: input, shape index: {}]   ;;  %s419_s0 = inlined_call_operand.vmem [shape: f32[4,128], index: 0, kind: input, shape index: {}]   ;;  %s420_s2 = inlined_call_operand.vmem [shape: f32[64,128], index: 2, kind: input, shape index: {}]   ;;  %s421_s6 = inlined_call_operand.vmem [shape: f32[4,256], index: 6, kind: output, shape index: {0}]   ;;  %s422_s3 = inlined_call_operand.vmem [shape: f32[128,4], index: 3, kind: input, shape index: {}]   ;;  %s423_s7 = inlined_call_operand.vmem [shape: f32[2,128], index: 7, kind: output, shape index: {1}]   ;;  %s424_s5 = inlined_call_operand.vmem [shape: f32[2,128], index: 5, kind: input, shape index: {}]   ;;  %s425_s4 = inlined_call_operand.vmem [shape: f32[4,128], index: 4, kind: input, shape index: {}]  }
   0x1   :  { %v45_v0 = vld [vmem:[%s418_s1 + $0x78] sm:$0xff]  ;;  %v44_v1 = vld [vmem:[%s418_s1 + $0x70] sm:$0xff]  ;;  %v43_v2 = vld [vmem:[%s418_s1 + $0x68] sm:$0xff]  ;;  %vm160_vm5 = vcmask 31744  }
   0x2   :  { %46 = vmatpush.msra.mxu0 %v45_v0  ;;  %v42_v3 = vld [vmem:[%s418_s1 + $0x60] sm:$0xff]  ;;  %v81_v5 = vld [vmem:[%s420_s2 + $0x38] sm:$0xff]  ;;  %v80_v7 = vld [vmem:[%s420_s2 + $0x30] sm:$0xff] }
   0x3   :  { %v25_v4 = vld [vmem:[%s419_s0] sm:$0xf]  ;;  %v41_v6 = vld [vmem:[%s418_s1 + $0x58] sm:$0xff]  ;;  %93 = vmatpush.msra.mxu1 %v81_v5  ;;  %v79_v8 = vld [vmem:[%s420_s2 + $0x28] sm:$0xff] }
   0x4   :  { %47 = vmatpush.msra.mxu0 %v44_v1  ;;  %26 = vst [vmem:[%s421_s6] sm:$0xf] %v25_v4  ;;  %v40_v9 = vld [vmem:[%s418_s1 + $0x50] sm:$0xff]  ;;  %v78_v10 = vld [vmem:[%s420_s2 + $0x20] sm:$0xff]  ;;  %v39_v11 = vld [vmem:[%s418_s1 + $0x48] sm:$0xff]  ;;  %v28_v19 = vmul.f32 0.2, %v25_v4 }
   0x5   :  { %94 = vmatpush.msra.mxu1 %v80_v7  ;;  %v38_v12 = vld [vmem:[%s418_s1 + $0x40] sm:$0xff]  ;;  %v37_v13 = vld [vmem:[%s418_s1 + $0x38] sm:$0xff]  ;;  %v36_v14 = vld [vmem:[%s418_s1 + $0x30] sm:$0xff]  ;;  %vm27_vm0 = vcmp.ge.f32.partialorder %v25_v4, 0.0 }
   0x6   :  { %48 = vmatpush.msra.mxu0 %v43_v2  ;;  %v35_v15 = vld [vmem:[%s418_s1 + $0x28] sm:$0xff]  ;;  %v34_v16 = vld [vmem:[%s418_s1 + $0x20] sm:$0xff]  ;;  %v33_v17 = vld [vmem:[%s418_s1 + $0x18] sm:$0xff]  ;;  %v29_v22 = vsel %vm27_vm0, %v25_v4, %v28_v19 }
   0x7   :  { %95 = vmatpush.msra.mxu1 %v79_v8  ;;  %v32_v18 = vld [vmem:[%s418_s1 + $0x10] sm:$0xff]  ;;  %v31_v20 = vld [vmem:[%s418_s1 + $0x8] sm:$0xff]  ;;  %v30_v21 = vld [vmem:[%s418_s1] sm:$0xff] }
   0x8   :  { %49 = vmatpush.msra.mxu0 %v42_v3  ;;  %v77_v23 = vld [vmem:[%s420_s2 + $0x18] sm:$0xff]  ;;  %v76_v24 = vld [vmem:[%s420_s2 + $0x10] sm:$0xff]  ;;  %v75_v25 = vld [vmem:[%s420_s2 + $0x8] sm:$0xff] }
   0x9   :  { %96 = vmatpush.msra.mxu1 %v78_v10  ;;  %v74_v26 = vld [vmem:[%s420_s2] sm:$0xff]  ;;  %v138_v27 = vld [vmem:[%s422_s3 + $0x78] sm:$0xff]  ;;  %v137_v28 = vld [vmem:[%s422_s3 + $0x70] sm:$0xff] }
   0xa   :  { %50 = vmatpush.msra.mxu0 %v41_v6  ;;  %139 = vmatpush.msra.mxu2 %v138_v27  ;;  %v136_v29 = vld [vmem:[%s422_s3 + $0x68] sm:$0xff]  ;;  %v135_v30 = vld [vmem:[%s422_s3 + $0x60] sm:$0xff]  ;;  %v134_v31 = vld [vmem:[%s422_s3 + $0x58] sm:$0xff] }
   0xb   :  { %97 = vmatpush.msra.mxu1 %v77_v23  ;;  %v133_v32 = vld [vmem:[%s422_s3 + $0x50] sm:$0xff]  ;;  %v132_v33 = vld [vmem:[%s422_s3 + $0x48] sm:$0xff]  ;;  %v131_v39 = vld [vmem:[%s422_s3 + $0x40] sm:$0xff] }
   0xc   :  { %51 = vmatpush.msra.mxu0 %v40_v9  ;;  %140 = vmatpush.msra.mxu2 %v137_v28  ;;  %v130_v40 = vld [vmem:[%s422_s3 + $0x38] sm:$0xff]  ;;  %v129_v41 = vld [vmem:[%s422_s3 + $0x30] sm:$0xff]  ;;  %v128_v42 = vld [vmem:[%s422_s3 + $0x28] sm:$0xff] }
   0xd   :  { %98 = vmatpush.msra.mxu1 %v76_v24  ;;  %v127_v43 = vld [vmem:[%s422_s3 + $0x20] sm:$0xff]  ;;  %v126_v44 = vld [vmem:[%s422_s3 + $0x18] sm:$0xff]  ;;  %v125_v45 = vld [vmem:[%s422_s3 + $0x10] sm:$0xff] }
   0xe   :  { %52 = vmatpush.msra.mxu0 %v39_v11  ;;  %141 = vmatpush.msra.mxu2 %v136_v29  ;;  %v124_v46 = vld [vmem:[%s422_s3 + $0x8] sm:$0xff]  ;;  %v123_v47 = vld [vmem:[%s422_s3] sm:$0xff] }
   0xf   :  { %99 = vmatpush.msra.mxu1 %v75_v25  ;;  %v159_v1 = vld [vmem:[%s425_s4] sm:$0xf] }
  0x10   :  { %53 = vmatpush.msra.mxu0 %v38_v12  ;;  %142 = vmatpush.msra.mxu2 %v135_v30 }
  0x11   :  { %100 = vmatpush.msra.mxu1 %v74_v26  ;;  %228 = vmatpush.msk.msra.mxu3 %vm164_vm4, %v159_v1 }
  0x12   :  { %54 = vmatpush.msra.mxu0 %v37_v13  ;;  %143 = vmatpush.msra.mxu2 %v134_v31 }
  0x14   :  { %55 = vmatpush.msra.mxu0 %v36_v14  ;;  %144 = vmatpush.msra.mxu2 %v133_v32 }
  0x16   :  { %56 = vmatpush.msra.mxu0 %v35_v15  ;;  %145 = vmatpush.msra.mxu2 %v132_v33 }
  0x18   :  { %57 = vmatpush.msra.mxu0 %v34_v16  ;;  %146 = vmatpush.msra.mxu2 %v131_v39 }
  0x1a   :  { %58 = vmatpush.msra.mxu0 %v33_v17  ;;  %147 = vmatpush.msra.mxu2 %v130_v40 }
  0x1c   :  { %59 = vmatpush.msra.mxu0 %v32_v18  ;;  %148 = vmatpush.msra.mxu2 %v129_v41  ;;  %v230_v18 = vld [vmem:[%s424_s5] ss:$0 sm:$0xff] }
  0x1e   :  { %60 = vmatpush.msra.mxu0 %v31_v20  ;;  %149 = vmatpush.msra.mxu2 %v128_v42  ;;  %v231_v20 = vld [vmem:[%s424_s5 + $0x1] ss:$0 sm:$0xff] }
  0x20   :  { %61 = vmatpush.msra.mxu0 %v30_v21  ;;  %150 = vmatpush.msra.mxu2 %v127_v43 }
  0x21   :  { %62 = vmatmul.f32.vlgmr.msra.gmra.mxu0 %v29_v22 }
  0x22   :  { %151 = vmatpush.msra.mxu2 %v126_v44 }
  0x24   :  { %152 = vmatpush.msra.mxu2 %v125_v45 }
  0x26   :  { %153 = vmatpush.msra.mxu2 %v124_v46 }
  0x28   :  { %154 = vmatpush.msra.mxu2 %v123_v47 }
  0x9e   :  { %v63_v34 = vpop.f32.mrf.mxu0 }
  0x9f   :  { %v67_v35 = vrot.slane %v63_v34, 2 }
  0xa1   :  { %v69_v36 = vmax.f32 %v63_v34, %v67_v35 }
  0xa3   :  { %v73_v37 = vmax.f32 %v69_v36, 0.0  ;;  %v71_v38 = vsel %vm70_vm1, %v69_v36, 0.0 }
  0xa4   :  { %72 = vst [vmem:[%s423_s7] sm:$0x3] %v71_v38 }
  0xa5   :  { %227 = vmatmul.msk.f32.vlgmr.msra.gmra.mxu1 %vm70_vm1, %v73_v37 }
 0x122   :  { %v102_v48 = vpop.f32.mrf.mxu1 }
 0x123   :  { %v106_v49 = vsel %vm105_vm2, %v102_v48, 0.0  ;;  %v113_v50 = vmul.f32 %v102_v48, %v102_v48 }
 0x124   :  { %v107_v51 = vrot.slane %v106_v49, 4 }
 0x125   :  { %v114_v52 = vsel %vm105_vm2, %v113_v50, 0.0 }
 0x126   :  { %v108_v53 = vadd.f32 %v107_v51, %v106_v49  ;;  %v115_v54 = vrot.slane %v114_v52, 4 }
 0x128   :  { %v109_v55 = vrot.slane %v108_v53, 2  ;;  %v116_v56 = vadd.f32 %v115_v54, %v114_v52 }
 0x12a   :  { %v110_v57 = vadd.f32 %v109_v55, %v108_v53  ;;  %v117_v58 = vrot.slane %v116_v56, 2 }
 0x12c   :  { %v111_v59 = vrot.slane %v110_v57, 1  ;;  %v118_v60 = vadd.f32 %v117_v58, %v116_v56 }
 0x12e   :  { %v119_v61 = vrot.slane %v118_v60, 1  ;;  %v112_v62 = vadd.f32 %v111_v59, %v110_v57 }
 0x130   :  { %v120_v63 = vadd.f32 %v119_v61, %v118_v60 }
 0x132   :  { %v122_v0 = vsel %vm121_vm3, %v112_v62, %v120_v63 }
 0x133   :  { %155 = vmatmul.f32.vlgmr.msra.gmra.mxu2 %v122_v0 }
 0x1b6   :  { %v156_v2 = vpop.f32.mrf.mxu2 }
 0x1b7   :  { %229 = vmatmul.msk.f32.vlgmr.msra.gmra.mxu3 %vm160_vm5, %v156_v2 }
 0x23a   :  { %v185_v3 = vpop.f32.mrf.mxu3 }
 0x23b   :  { %v188_v4 = vmul.f32 %v185_v3, %v185_v3  ;;  %v193_v13 = vperm.slane %v185_v3, 0 }
 0x23d   :  { %v190_v5 = vrot.slane %v188_v4, 7  ;;  %v194_v16 = vsub.f32 %v102_v48, %v193_v13 }
 0x23f   :  { %v192_v6 = vsub.f32 %v185_v3, %v190_v5 }
 0x241   :  { %v195_v7 = vadd.f32 1e-05, %v192_v6 }
 0x243   :  { %232 = vrsqrt.f32 %v195_v7  ;;  %vm202_vm7 = vweird.f32 %v195_v7 }
 0x249   :  { %v233_v8 = vpop.eup %232 }
 0x24a   :  { %v197_v9 = vmul.f32 %v233_v8, %v195_v7  ;;  %vm203_vm6 = vweird.f32 %v233_v8 }
 0x24b   :  { %vm204_vm8 = vmor %vm202_vm7, %vm203_vm6 }
 0x24c   :  { %v198_v10 = vmul.f32 %v233_v8, %v197_v9 }
 0x24e   :  { %v199_v11 = vmul.f32 0.5, %v198_v10 }
 0x250   :  { %v200_v12 = vsub.f32 1.5, %v199_v11 }
 0x252   :  { %v201_v14 = vmul.f32 %v233_v8, %v200_v12 }
 0x254   :  { %v205_v15 = vsel %vm204_vm8, %v233_v8, %v201_v14 }
 0x255   :  { %v206_v17 = vperm.slane %v205_v15, 1 }
 0x257   :  { %v207_v19 = vmul.f32 %v206_v17, %v194_v16 }
 0x259   :  { %v210_v21 = vmul.f32 %v230_v18, %v207_v19 }
 0x25b   :  { %v213_v22 = vadd.f32 %v231_v20, %v210_v21 }
 0x25d   :  { %214 = vst [vmem:[%s421_s6 + $0x4] sm:$0x3] %v213_v22  ;;  %v216_v23 = vrot.slane %v213_v22, 6 }
 0x25f   :  { %218 = vst [vmem:[%s421_s6 + $0x4] sm:$0xc] %v216_v23 }

</bundles_post_ra>
